<compile_context>
chip_gen: v7x
topology: tpu7x:2x2x1
jax: 0.10.0
libtpu: 0.0.40
codegen_flags: <defaults>
</compile_context>

<pallas_src>
import jax
import jax.numpy as jnp
from jax.experimental import pallas as pl
from jax.experimental.pallas import tpu as pltpu


def _cdiv(a, b):
    return (a + b - 1) // b


def _round_up(a, b):
    return ((a + b - 1) // b) * b


def _outconv_kernel(x_ref, w_ref, b_ref, o_ref):
    # x_ref: (B_T, C_in, TS)   activation tile, spatial on lanes
    # w_ref: (C_out, C_in)     resident weight
    # b_ref: (C_out, 1)        f32 bias column (pre-cast in wrapper; broadcasts over lanes)
    # o_ref: (B_T, C_out, TS)  output tile, lane-dense
    w = w_ref[...]
    bias = b_ref[...]            # hoisted out of the unrolled batch loop
    b_tile = x_ref.shape[0]      # static
    for b in range(b_tile):      # static unroll; b_tile is capped small (<= 8)
        acc = jnp.dot(w, x_ref[b], preferred_element_type=jnp.float32)
        o_ref[b] = (acc + bias).astype(o_ref.dtype)


def _choose_tiles(n, hw, c_in, c_out, itemsize, *, byte_target, b_tile_cap, vmem_budget):
    """Pick (b_tile, ts).

    ts     : lane-dense spatial tile (multiple of 128 or full HW), sized so that
             (C_in + C_out) * ts * itemsize approaches `byte_target` per grid step.
    b_tile : batch tile, grown only when a single spatial tile already covers HW but the
             per-step byte volume is still below the target.
    """
    per_lane_bytes = (c_in + c_out) * itemsize
    # Weight + bias are logically resident but Pallas double-buffers them too.
    fixed_bytes = 2 * (c_out * c_in + c_out) * itemsize

    if hw <= 128:
        # Full-extent last dim is a legal block shape (masked vst only for tiny HW).
        ts = hw
    else:
        ts_cap = _round_up(hw, 128)
        ts_want = _round_up(max(128, _cdiv(byte_target, per_lane_bytes)), 128)
        ts = min(ts_cap, ts_want)
        # Shrink until double-buffered x/out tiles (+ weight/bias) fit the VMEM budget.
        while ts > 128 and fixed_bytes + 2 * ts * per_lane_bytes > vmem_budget:
            ts = max(128, ((ts // 2) // 128) * 128)

    b_tile = 1
    per_image_step_bytes = ts * per_lane_bytes
    if ts >= hw and per_image_step_bytes < byte_target:
        b_tile = min(n, b_tile_cap, max(1, _cdiv(byte_target, per_image_step_bytes)))
        while b_tile > 1 and fixed_bytes + 2 * b_tile * per_image_step_bytes > vmem_budget:
            b_tile -= 1
    return b_tile, ts


def outconv_1x1(x_nchw, weight, bias, *,
                byte_target=2 * 1024 * 1024,               # ~1-2+ MiB/step -> near HBM roofline
                b_tile_cap=8,                               # static unroll bound in the kernel
                vmem_tile_budget_bytes=24 * 1024 * 1024,    # safe on v7x (64 MiB) and v5e/v6e
                vmem_limit_bytes=48 * 1024 * 1024):
    """1x1 conv (same math as nn.Conv2d(in_ch, out_ch, 1)), NCHW in / NCHW out.

    x_nchw : (N, C_in, H, W)
    weight : (C_out, C_in, 1, 1)   (PyTorch layout)
    bias   : (C_out,)
    returns: (N, C_out, H, W)
    """
    N, C_in, H, W = x_nchw.shape
    C_out = weight.shape[0]
    HW = H * W

    # Free (contiguous) reshapes only — no transposes, no padding copies.
    x3 = x_nchw.reshape(N, C_in, HW)
    w2 = weight.reshape(C_out, C_in).astype(x_nchw.dtype)   # MXU dtype == activation dtype
    b2 = bias.reshape(C_out, 1).astype(jnp.float32)         # pre-cast: no per-step VPU cast

    itemsize = jnp.dtype(x_nchw.dtype).itemsize
    b_tile, ts = _choose_tiles(N, HW, C_in, C_out, itemsize,
                               byte_target=byte_target, b_tile_cap=b_tile_cap,
                               vmem_budget=vmem_tile_budget_bytes)
    n_b = _cdiv(N, b_tile)
    n_s = _cdiv(HW, ts)

    flops = 2 * N * HW * C_in * C_out
    bytes_accessed = (itemsize * N * HW * (C_in + C_out)
                      + w2.size * jnp.dtype(w2.dtype).itemsize
                      + b2.size * 4)

    y3 = pl.pallas_call(
        _outconv_kernel,
        out_shape=jax.ShapeDtypeStruct((N, C_out, HW), x_nchw.dtype),
        grid_spec=pltpu.PrefetchScalarGridSpec(
            num_scalar_prefetch=0,
            grid=(n_b, n_s),
            in_specs=[
                # Batch-blocked activation tile; spatial (lanes) tiled.
                pl.BlockSpec((b_tile, C_in, ts), lambda nb, s: (nb, 0, s)),
                # Weight and bias resident across the whole grid.
                pl.BlockSpec((C_out, C_in), lambda nb, s: (0, 0)),
                pl.BlockSpec((C_out, 1), lambda nb, s: (0, 0)),
            ],
            out_specs=pl.BlockSpec((b_tile, C_out, ts), lambda nb, s: (nb, 0, s)),
        ),
        compiler_params=pltpu.CompilerParams(
            dimension_semantics=("parallel", "parallel"),
            vmem_limit_bytes=vmem_limit_bytes,
        ),
        cost_estimate=pl.CostEstimate(
            flops=flops, transcendentals=0, bytes_accessed=bytes_accessed),
    )(x3, w2, b2)

    return y3.reshape(N, C_out, H, W)


def _reference(x, weight, bias):
    C_out, C_in = weight.shape[0], weight.shape[1]
    return (jnp.einsum("nihw,oi->nohw", x, weight.reshape(C_out, C_in))
            + bias[None, :, None, None])


if __name__ == "__main__":
    key = jax.random.PRNGKey(0)
    k_x, k_w, k_b, k_x2, k_x3, k_w3, k_b3 = jax.random.split(key, 7)

    # Primary config (matches the original spec-scale test): batch=2, C_in=4, C_out=3, 16x16.
    N, C_in, C_out, H, W = 2, 4, 3, 16, 16
    x = jax.random.normal(k_x, (N, C_in, H, W), dtype=jnp.float32)

    # Deterministic params (mimic PyTorch Conv2d uniform(-1/sqrt(fan_in), 1/sqrt(fan_in))).
    bound = 1.0 / (C_in ** 0.5)
    weight = jax.random.uniform(k_w, (C_out, C_in, 1, 1), dtype=jnp.float32,
                                minval=-bound, maxval=bound)
    bias = jax.random.uniform(k_b, (C_out,), dtype=jnp.float32,
                              minval=-bound, maxval=bound)

    y = jax.block_until_ready(outconv_1x1(x, weight, bias))
    y_ref = _reference(x, weight, bias)
    assert y.shape == (N, C_out, H, W)
    assert jnp.allclose(y, y_ref, atol=1e-5), "mismatch vs reference (primary)"

    # Ragged spatial extent (H*W not a multiple of the 128-lane tile):
    # exercises the no-pad spatial boundary-masking path.
    N2, H2, W2 = 1, 10, 13
    x2 = jax.random.normal(k_x2, (N2, C_in, H2, W2), dtype=jnp.float32)
    y2 = jax.block_until_ready(outconv_1x1(x2, weight, bias))
    y2_ref = _reference(x2, weight, bias)
    assert y2.shape == (N2, C_out, H2, W2)
    assert jnp.allclose(y2, y2_ref, atol=1e-5), "mismatch vs reference (ragged)"

    # Small-HW config (HW <= 128): exercises the full-extent lane branch + batch blocking.
    N3, C_in3, C_out3, H3, W3 = 3, 5, 2, 8, 8
    bound3 = 1.0 / (C_in3 ** 0.5)
    x3 = jax.random.normal(k_x3, (N3, C_in3, H3, W3), dtype=jnp.float32)
    weight3 = jax.random.uniform(k_w3, (C_out3, C_in3, 1, 1), dtype=jnp.float32,
                                 minval=-bound3, maxval=bound3)
    bias3 = jax.random.uniform(k_b3, (C_out3,), dtype=jnp.float32,
                               minval=-bound3, maxval=bound3)
    y3 = jax.block_until_ready(outconv_1x1(x3, weight3, bias3))
    y3_ref = _reference(x3, weight3, bias3)
    assert y3.shape == (N3, C_out3, H3, W3)
    assert jnp.allclose(y3, y3_ref, atol=1e-5), "mismatch vs reference (small-HW batch-blocked)"

    print("KERNEL_OK")
</pallas_src>

<mosaic_0001>
module attributes {stable_mosaic.version = 11 : i64} {
  func.func @_outconv_kernel(%arg0: i32, %arg1: i32, %arg2: memref<2x4x256xf32, #tpu.memory_space<vmem>>, %arg3: memref<3x4xf32, #tpu.memory_space<vmem>>, %arg4: memref<3x1xf32, #tpu.memory_space<vmem>>, %arg5: memref<2x3x256xf32, #tpu.memory_space<vmem>>) attributes {dimension_semantics = [#tpu.dimension_semantics<parallel>, #tpu.dimension_semantics<parallel>], iteration_bounds = array<i64: 1, 1>, scalar_prefetch = 0 : i64, scratch_operands = 0 : i64, tpu.core_type = #tpu.core_type<tc>, window_params = [{transform_indices = @transform_0, window_bounds = array<i64: 2, 4, 256>}, {pipeline_mode = #tpu.pipeline_mode<synchronous>, transform_indices = @transform_1, window_bounds = array<i64: 3, 4>}, {pipeline_mode = #tpu.pipeline_mode<synchronous>, transform_indices = @transform_2, window_bounds = array<i64: 3, 1>}, {transform_indices = @transform_3, window_bounds = array<i64: 2, 3, 256>}]} {
    %c0 = arith.constant 0 : index
    %c0_0 = arith.constant 0 : index
    %0 = vector.load %arg3[%c0, %c0_0] : memref<3x4xf32, #tpu.memory_space<vmem>>, vector<3x4xf32>
    %c0_1 = arith.constant 0 : index
    %c0_2 = arith.constant 0 : index
    %1 = vector.load %arg4[%c0_1, %c0_2] : memref<3x1xf32, #tpu.memory_space<vmem>>, vector<3x1xf32>
    %c0_3 = arith.constant 0 : index
    %c0_4 = arith.constant 0 : index
    %c0_5 = arith.constant 0 : index
    %2 = vector.load %arg2[%c0_3, %c0_4, %c0_5] : memref<2x4x256xf32, #tpu.memory_space<vmem>>, vector<1x4x256xf32>
    %3 = vector.shape_cast %2 : vector<1x4x256xf32> to vector<4x256xf32>
    %cst = arith.constant dense<0.000000e+00> : vector<3x256xf32>
    %4 = tpu.matmul %0, %3, %cst {dimension_numbers = #tpu.dot_dimension_numbers<[1], [0], [0], [1], [0, 0, 1, 1], [], []>} : vector<3x4xf32>, vector<4x256xf32>, vector<3x256xf32> -> vector<3x256xf32>
    %5 = vector.broadcast %1 : vector<3x1xf32> to vector<3x256xf32>
    %6 = arith.addf %4, %5 : vector<3x256xf32>
    %c0_6 = arith.constant 0 : index
    %c0_7 = arith.constant 0 : index
    %c0_8 = arith.constant 0 : index
    %7 = vector.load %arg5[%c0_6, %c0_7, %c0_8] : memref<2x3x256xf32, #tpu.memory_space<vmem>>, vector<1x3x256xf32>
    %8 = vector.shape_cast %7 : vector<1x3x256xf32> to vector<3x256xf32>
    %9 = vector.shape_cast %6 : vector<3x256xf32> to vector<1x3x256xf32>
    tpu.vector_store %arg5[%c0_6, %c0_7, %c0_8], %9 {strides = array<i32>} : memref<2x3x256xf32, #tpu.memory_space<vmem>>, vector<1x3x256xf32>,
    %c1 = arith.constant 1 : index
    %c0_9 = arith.constant 0 : index
    %c0_10 = arith.constant 0 : index
    %10 = vector.load %arg2[%c1, %c0_9, %c0_10] : memref<2x4x256xf32, #tpu.memory_space<vmem>>, vector<1x4x256xf32>
    %11 = vector.shape_cast %10 : vector<1x4x256xf32> to vector<4x256xf32>
    %cst_11 = arith.constant dense<0.000000e+00> : vector<3x256xf32>
    %12 = tpu.matmul %0, %11, %cst_11 {dimension_numbers = #tpu.dot_dimension_numbers<[1], [0], [0], [1], [0, 0, 1, 1], [], []>} : vector<3x4xf32>, vector<4x256xf32>, vector<3x256xf32> -> vector<3x256xf32>
    %13 = vector.broadcast %1 : vector<3x1xf32> to vector<3x256xf32>
    %14 = arith.addf %12, %13 : vector<3x256xf32>
    %c1_12 = arith.constant 1 : index
    %c0_13 = arith.constant 0 : index
    %c0_14 = arith.constant 0 : index
    %15 = vector.load %arg5[%c1_12, %c0_13, %c0_14] : memref<2x3x256xf32, #tpu.memory_space<vmem>>, vector<1x3x256xf32>
    %16 = vector.shape_cast %15 : vector<1x3x256xf32> to vector<3x256xf32>
    %17 = vector.shape_cast %14 : vector<3x256xf32> to vector<1x3x256xf32>
    tpu.vector_store %arg5[%c1_12, %c0_13, %c0_14], %17 {strides = array<i32>} : memref<2x3x256xf32, #tpu.memory_space<vmem>>, vector<1x3x256xf32>,
    return
  }
  func.func @transform_0(%arg0: i32, %arg1: i32) -> (i32, i32, i32) {
    %c0_i32 = arith.constant 0 : i32
    %c0_i32_0 = arith.constant 0 : i32
    return %arg0, %c0_i32, %arg1 : i32, i32, i32
  }
  func.func @transform_1(%arg0: i32, %arg1: i32) -> (i32, i32) {
    %c0_i32 = arith.constant 0 : i32
    %c0_i32_0 = arith.constant 0 : i32
    %c0_i32_1 = arith.constant 0 : i32
    return %c0_i32, %c0_i32_0 : i32, i32
  }
  func.func @transform_2(%arg0: i32, %arg1: i32) -> (i32, i32) {
    %c0_i32 = arith.constant 0 : i32
    %c0_i32_0 = arith.constant 0 : i32
    %c0_i32_1 = arith.constant 0 : i32
    return %c0_i32, %c0_i32_0 : i32, i32
  }
  func.func @transform_3(%arg0: i32, %arg1: i32) -> (i32, i32, i32) {
    %c0_i32 = arith.constant 0 : i32
    %c0_i32_0 = arith.constant 0 : i32
    return %arg0, %c0_i32, %arg1 : i32, i32, i32
  }
}

</mosaic_0001>

<bundles_post_ra>
// kernel: tpu_custom_call.1
= control target key start
LH: loop header
LB: loop body
LE: loop exit
PB: predicated region body
PF: predicated region fallthrough
CT: control target
= control target key end

     0   :  { %8 = vsyncpa [#allocation3], 0  ;;  %s252_s12 = smov [#allocation2]   ;;  %s301_s0 = inlined_call_operand.hbm [shape: f32[2,4,256], index: 0, kind: input, shape index: {}]   ;;  %s302_s1 = inlined_call_operand.vmem [shape: f32[3,4], index: 1, kind: input, shape index: {}]   ;;  %s303_s2 = inlined_call_operand.vmem [shape: f32[3,1], index: 2, kind: input, shape index: {}]   ;;  %s304_s3 = inlined_call_operand.vmem [shape: f32[2,3,256], index: 3, kind: output, shape index: {}]  }
   0x1   :  { %s14_s13 = sshll.u32 %s252_s12, 4  ;;  %s228_s16 = scalar_lea.hbm %s301_s0, 256  ;;  %s15_s13 = int_to_ptr.vmem [resolvable:$true] %s14_s13 }
   0x2   :  { %p229_p0 = scmp.ne.s32.totalorder %s301_s0, %s228_s16  ;;  %p232_p1 = scmp.lt.u32.totalorder %s228_s16, %s301_s0 }
   0x4   :  { %p234_p2 = pnand %p232_p1, %p229_p0 }
   0x6   :  { %237 = shalt.err (!%p234_p2)
}
   0x7   :  { %s238_s21 = scalar_lea.vmem %s15_s13, 256  ;;  %p243_p4 = scmp.lt.s32.totalorder %s15_s13, %s15_s13 }
   0x8   :  { %p239_p3 = scmp.ne.s32.totalorder %s15_s13, %s238_s21  ;;  %p244_p5 = scmp.lt.s32.totalorder %s238_s21, %s238_s21 }
   0xa   :  { %p245_p6 = por %p244_p5, %p243_p4 }
   0xc   :  { %p246_p7 = pnand %p245_p6, %p239_p3 }
   0xe   :  { %249 = shalt.err (!%p246_p7)
}
   0xf   :  { %s253_s22 = smov 128   ;;  %s254_s23 = smov 8  }
  0x10   :  { %20 = dma.hbm_to_vmem [thread:$0]  %s301_s0, 256, %s15_s13, [#allocation3], %s253_s22, %s253_s22, %s254_s23  }
  0x11   :  { %250 = dma.done.wait [#allocation3], 256  }
  0x12   :  { %251 = vsyncadd [#allocation3], 4294967040  ;;  %v255_v0 = vmov 0.0   ;;  %v256_v1 = vmov 0   ;;  %v30_v2 = vld [vmem:[#allocation2] sm:$0xff]  ;;  %vm42_vm0 = vcmask 1043456  }
  0x13   :  { %111 = vmatprep.mubr.f32.mxu0 %v255_v0  ;;  %195 = vmatprep.mubr.f32.mxu1 %v255_v0  ;;  %v124_v3 = vld [vmem:[#allocation2 + $0x8] sm:$0xff]  ;;  %v37_v4 = vcombine.high %v30_v2, %v30_v2  ;;  %v29_v6 = vld [vmem:[%s303_s2] sm:$0x7]  ;;  %vm38_vm1 = vcmask 31744  }
  0x14   :  { %225 = vset.pattern.permute.xlu0 %v256_v1  ;;  %v126_v5 = vcombine.high %v124_v3, %v124_v3  ;;  %v28_v7 = vld [vmem:[%s302_s1] sm:$0x7] }
  0x15   :  { %33 = vperm.xlu0 %225, %v29_v6   ;;  %213 = vmatprep.subr.msk.mxu0 %vm42_vm0, %v37_v4 }
  0x16   :  { %216 = vmatprep.subr.msk.mxu1 %vm42_vm0, %v126_v5  ;;  %214 = vmatpush1.msk.msra.mxu0 %vm42_vm0, %v30_v2 }
  0x17   :  { %217 = vmatpush1.msk.msra.mxu1 %vm42_vm0, %v124_v3  ;;  %215 = vmatmul.mubr.msk.f32.vlgmr.msra.gmra.mrb[0].mxu0 %vm38_vm1, %v28_v7 }
  0x18   :  { %218 = vmatmul.mubr.msk.f32.vlgmr.msra.gmra.mrb[0].mxu1 %vm38_vm1, %v28_v7 }
  0x94   :  { %v34_v8 = vpop.permute.xlu0 %33 }
  0xea   :  { %v113_v9 = vpop.f32.mrb[0].mxu0 }
  0xeb   :  { %v197_v10 = vpop.f32.mrb[0].mxu1  ;;  %v114_v11 = vadd.f32 %v113_v9, %v34_v8  ;;  %v115_v13 = vpop.f32.mrb[1].mxu0 }
  0xec   :  { %v198_v12 = vadd.f32 %v197_v10, %v34_v8  ;;  %v199_v14 = vpop.f32.mrb[1].mxu1  ;;  %v116_v15 = vadd.f32 %v115_v13, %v34_v8 }
  0xed   :  { %v200_v16 = vadd.f32 %v199_v14, %v34_v8 }
  0xee   :  { %v120_v17 = vcombine.low %v114_v11, %v116_v15 }
  0xef   :  { %v204_v18 = vcombine.low %v198_v12, %v200_v16 }
  0xf0   :  { %122 = vst [vmem:[%s304_s3] sm:$0x77] %v120_v17 }
  0xf1   :  { %219 = vst [vmem:[%s304_s3 + $0x8] sm:$0x77] %v204_v18 }
  0xf2   :  { %212 = vsyncpa [#allocation3], 1 }

</bundles_post_ra>
